<compile_context>
chip_gen: v7x
topology: tpu7x:2x2x1
jax: 0.10.0
libtpu: 0.0.40
codegen_flags: <defaults>
</compile_context>

<pallas_src>
import functools

import jax
import jax.numpy as jnp
from jax.experimental import pallas as pl
from jax.experimental.pallas import tpu as pltpu


def _round_up(n: int, m: int) -> int:
    return ((n + m - 1) // m) * m


def _sublayer_connection_kernel(x_ref, a2_ref, b2_ref, w_ref, bw_ref, o_ref,
                                *, eps: float):
    # x_ref: (TM, D), a2/b2/bw: (1, D) f32, w: (D, D) f32
    x = x_ref[...].astype(jnp.float32)
    d = x.shape[-1]

    # --- LayerNorm (torch.std is unbiased: divide by N-1; eps added to std) ---
    mean = jnp.mean(x, axis=-1, keepdims=True)
    diff = x - mean
    var = jnp.sum(diff * diff, axis=-1, keepdims=True) * (1.0 / (d - 1))
    std = jnp.sqrt(var)

    # Divide -> EUP reciprocal (free bundle slot) on the (TM, 1) column, with
    # one Newton-Raphson refinement for near-exact f32 parity.  The (TM, D)
    # normalization is then just a broadcast multiply on the VPU.
    s = std + eps
    inv = pl.reciprocal(s, approx=True)
    inv = inv * (2.0 - s * inv)
    normed = a2_ref[...] * (diff * inv) + b2_ref[...]

    # --- sublayer: Linear(size, size) on the normalized activations (MXU) ---
    y = jnp.dot(normed, w_ref[...], preferred_element_type=jnp.float32)

    # --- dropout (eval mode => identity) + residual; bias folded into the add.
    o_ref[...] = (x + y + bw_ref[...]).astype(o_ref.dtype)


def sublayer_connection(x, a2, b2, w, bw, *, eps=1e-6, tm=256):
    """x: (B, S, D). Returns x + Linear(LayerNorm(x)) (dropout = identity)."""
    B, S, D = x.shape
    rows = B * S
    xf = x.reshape(rows, D)

    # Tile size: multiple of 8 sublanes, no larger than the (rounded) row count.
    tm_eff = min(_round_up(tm, 8), _round_up(rows, 8))
    padded_rows = _round_up(rows, tm_eff)
    if padded_rows != rows:
        # Pad with zeros; std of a zero row is 0, so (std + eps) stays finite
        # and the padded rows are simply sliced off afterwards.
        xf = jnp.pad(xf, ((0, padded_rows - rows), (0, 0)))

    # Cast params once here (not per grid step inside the kernel).
    a2_2d = a2.reshape(1, D).astype(jnp.float32)
    b2_2d = b2.reshape(1, D).astype(jnp.float32)
    bw_2d = bw.reshape(1, D).astype(jnp.float32)
    w_f32 = w.astype(jnp.float32)

    # VMEM budget: double-buffered x/out tiles + replicated params + f32 temps.
    est_bytes = 4 * (2 * tm_eff * D        # x tile (double-buffered)
                     + 2 * tm_eff * D      # out tile (double-buffered)
                     + 2 * (D * D + 3 * D) # weight + vectors
                     + 3 * tm_eff * D)     # f32 temporaries (diff/normed/y)
    vmem_limit = min(64 << 20, max(32 << 20, 2 * est_bytes + (2 << 20)))

    cost = pl.CostEstimate(
        flops=2 * padded_rows * D * D,
        transcendentals=padded_rows,
        bytes_accessed=4 * (2 * padded_rows * D + D * D + 3 * D),
    )

    kernel = functools.partial(_sublayer_connection_kernel, eps=eps)

    out = pl.pallas_call(
        kernel,
        out_shape=jax.ShapeDtypeStruct((padded_rows, D), x.dtype),
        grid_spec=pltpu.PrefetchScalarGridSpec(
            num_scalar_prefetch=0,
            grid=(padded_rows // tm_eff,),
            in_specs=[
                pl.BlockSpec((tm_eff, D), lambda i: (i, 0)),  # x tile
                pl.BlockSpec((1, D), lambda i: (0, 0)),       # a_2
                pl.BlockSpec((1, D), lambda i: (0, 0)),       # b_2
                pl.BlockSpec((D, D), lambda i: (0, 0)),       # sublayer weight
                pl.BlockSpec((1, D), lambda i: (0, 0)),       # sublayer bias
            ],
            out_specs=pl.BlockSpec((tm_eff, D), lambda i: (i, 0)),
        ),
        compiler_params=pltpu.CompilerParams(
            dimension_semantics=("parallel",),
            vmem_limit_bytes=vmem_limit,
        ),
        cost_estimate=cost,
        # NOTE: if the caller does not need x afterwards, pass
        # input_output_aliases={0: 0} to reuse the HBM buffer (kept off here
        # because the self-test reuses x for the reference computation).
    )(xf, a2_2d, b2_2d, w_f32, bw_2d)

    if padded_rows != rows:
        out = out[:rows]
    return out.reshape(B, S, D)


def _reference(x, a2, b2, w, bw, eps=1e-6):
    x32 = x.astype(jnp.float32)
    d = x.shape[-1]
    mean = jnp.mean(x32, axis=-1, keepdims=True)
    diff = x32 - mean
    var = jnp.sum(diff * diff, axis=-1, keepdims=True) / (d - 1)
    std = jnp.sqrt(var)
    normed = a2 * diff / (std + eps) + b2
    y = normed @ w + bw
    return (x32 + y).astype(x.dtype)


def _check(B, S, D, key):
    kx, kw, kb = jax.random.split(key, 3)
    x = jax.random.normal(kx, (B, S, D), dtype=jnp.float32)

    # LayerNorm params exactly as in __init__: ones / zeros.
    a2 = jnp.ones((D,), dtype=jnp.float32)
    b2 = jnp.zeros((D,), dtype=jnp.float32)

    # Deterministic synthetic sublayer (Linear(size, size)).
    w = jax.random.normal(kw, (D, D), dtype=jnp.float32) * (1.0 / jnp.sqrt(D))
    bw = jax.random.normal(kb, (D,), dtype=jnp.float32) * 0.01

    out = sublayer_connection(x, a2, b2, w, bw)
    out = jax.block_until_ready(out)

    ref = _reference(x, a2, b2, w, bw)
    assert out.shape == (B, S, D)
    assert jnp.allclose(out, ref, atol=2e-4, rtol=2e-4), \
        f"mismatch vs reference at shape {(B, S, D)}"


if __name__ == "__main__":
    key = jax.random.PRNGKey(0)
    k0, k1, k2 = jax.random.split(key, 3)

    # Primary small shape (batch=2, seq=8, hidden=128).
    _check(2, 8, 128, k0)
    # Non-divisible row count -> exercises the padding path.
    _check(2, 67, 128, k1)
    # Multiple grid steps (rows=512, tm=256 -> grid of 2, megacore-splittable).
    _check(4, 128, 128, k2)

    print("KERNEL_OK")
</pallas_src>

<mosaic_0001>
module attributes {stable_mosaic.version = 11 : i64} {
  func.func @_sublayer_connection_kernel(%arg0: i32, %arg1: memref<16x128xf32, #tpu.memory_space<vmem>>, %arg2: memref<1x128xf32, #tpu.memory_space<vmem>>, %arg3: memref<1x128xf32, #tpu.memory_space<vmem>>, %arg4: memref<128x128xf32, #tpu.memory_space<vmem>>, %arg5: memref<1x128xf32, #tpu.memory_space<vmem>>, %arg6: memref<16x128xf32, #tpu.memory_space<vmem>>) attributes {dimension_semantics = [#tpu.dimension_semantics<parallel>], iteration_bounds = array<i64: 1>, scalar_prefetch = 0 : i64, scratch_operands = 0 : i64, tpu.core_type = #tpu.core_type<tc>, window_params = [{transform_indices = @transform_0, window_bounds = array<i64: 16, 128>}, {pipeline_mode = #tpu.pipeline_mode<synchronous>, transform_indices = @transform_1, window_bounds = array<i64: 1, 128>}, {pipeline_mode = #tpu.pipeline_mode<synchronous>, transform_indices = @transform_2, window_bounds = array<i64: 1, 128>}, {pipeline_mode = #tpu.pipeline_mode<synchronous>, transform_indices = @transform_3, window_bounds = array<i64: 128, 128>}, {pipeline_mode = #tpu.pipeline_mode<synchronous>, transform_indices = @transform_4, window_bounds = array<i64: 1, 128>}, {transform_indices = @transform_5, window_bounds = array<i64: 16, 128>}]} {
    %c0 = arith.constant 0 : index
    %c0_0 = arith.constant 0 : index
    %0 = vector.load %arg1[%c0, %c0_0] : memref<16x128xf32, #tpu.memory_space<vmem>>, vector<16x128xf32>
    %cst = arith.constant dense<0.000000e+00> : vector<16xf32>
    %1 = vector.multi_reduction <add>, %0, %cst [1] : vector<16x128xf32> to vector<16xf32>
    %2 = vector.shape_cast %1 : vector<16xf32> to vector<16x1xf32>
    %cst_1 = arith.constant 1.280000e+02 : f32
    %3 = vector.broadcast %cst_1 : f32 to vector<16x1xf32>
    %4 = arith.divf %2, %3 : vector<16x1xf32>
    %5 = vector.broadcast %4 : vector<16x1xf32> to vector<16x128xf32>
    %6 = arith.subf %0, %5 : vector<16x128xf32>
    %7 = arith.mulf %6, %6 : vector<16x128xf32>
    %cst_2 = arith.constant dense<0.000000e+00> : vector<16xf32>
    %8 = vector.multi_reduction <add>, %7, %cst_2 [1] : vector<16x128xf32> to vector<16xf32>
    %9 = vector.shape_cast %8 : vector<16xf32> to vector<16x1xf32>
    %cst_3 = arith.constant 0.00787401571 : f32
    %10 = vector.broadcast %cst_3 : f32 to vector<16x1xf32>
    %11 = arith.mulf %9, %10 : vector<16x1xf32>
    %12 = math.sqrt %11 : vector<16x1xf32>
    %cst_4 = arith.constant 9.99999997E-7 : f32
    %13 = vector.broadcast %cst_4 : f32 to vector<16x1xf32>
    %14 = arith.addf %12, %13 : vector<16x1xf32>
    %15 = tpu.reciprocal %14 {approx = true} : vector<16x1xf32> -> vector<16x1xf32>
    %16 = arith.mulf %14, %15 : vector<16x1xf32>
    %cst_5 = arith.constant 2.000000e+00 : f32
    %17 = vector.broadcast %cst_5 : f32 to vector<16x1xf32>
    %18 = arith.subf %17, %16 : vector<16x1xf32>
    %19 = arith.mulf %15, %18 : vector<16x1xf32>
    %c0_6 = arith.constant 0 : index
    %c0_7 = arith.constant 0 : index
    %20 = vector.load %arg2[%c0_6, %c0_7] : memref<1x128xf32, #tpu.memory_space<vmem>>, vector<1x128xf32>
    %21 = vector.broadcast %19 : vector<16x1xf32> to vector<16x128xf32>
    %22 = arith.mulf %6, %21 : vector<16x128xf32>
    %23 = vector.broadcast %20 : vector<1x128xf32> to vector<16x128xf32>
    %24 = arith.mulf %23, %22 : vector<16x128xf32>
    %c0_8 = arith.constant 0 : index
    %c0_9 = arith.constant 0 : index
    %25 = vector.load %arg3[%c0_8, %c0_9] : memref<1x128xf32, #tpu.memory_space<vmem>>, vector<1x128xf32>
    %26 = vector.broadcast %25 : vector<1x128xf32> to vector<16x128xf32>
    %27 = arith.addf %24, %26 : vector<16x128xf32>
    %c0_10 = arith.constant 0 : index
    %c0_11 = arith.constant 0 : index
    %28 = vector.load %arg4[%c0_10, %c0_11] : memref<128x128xf32, #tpu.memory_space<vmem>>, vector<128x128xf32>
    %cst_12 = arith.constant dense<0.000000e+00> : vector<16x128xf32>
    %29 = tpu.matmul %27, %28, %cst_12 {dimension_numbers = #tpu.dot_dimension_numbers<[1], [0], [0], [1], [0, 0, 1, 1], [], []>} : vector<16x128xf32>, vector<128x128xf32>, vector<16x128xf32> -> vector<16x128xf32>
    %30 = arith.addf %0, %29 : vector<16x128xf32>
    %c0_13 = arith.constant 0 : index
    %c0_14 = arith.constant 0 : index
    %31 = vector.load %arg5[%c0_13, %c0_14] : memref<1x128xf32, #tpu.memory_space<vmem>>, vector<1x128xf32>
    %32 = vector.broadcast %31 : vector<1x128xf32> to vector<16x128xf32>
    %33 = arith.addf %30, %32 : vector<16x128xf32>
    %c0_15 = arith.constant 0 : index
    %c0_16 = arith.constant 0 : index
    %34 = vector.load %arg6[%c0_15, %c0_16] : memref<16x128xf32, #tpu.memory_space<vmem>>, vector<16x128xf32>
    tpu.vector_store %arg6[%c0_15, %c0_16], %33 {strides = array<i32>} : memref<16x128xf32, #tpu.memory_space<vmem>>, vector<16x128xf32>,
    return
  }
  func.func @transform_0(%arg0: i32) -> (i32, i32) {
    %c0_i32 = arith.constant 0 : i32
    %c0_i32_0 = arith.constant 0 : i32
    return %arg0, %c0_i32 : i32, i32
  }
  func.func @transform_1(%arg0: i32) -> (i32, i32) {
    %c0_i32 = arith.constant 0 : i32
    %c0_i32_0 = arith.constant 0 : i32
    %c0_i32_1 = arith.constant 0 : i32
    return %c0_i32, %c0_i32_0 : i32, i32
  }
  func.func @transform_2(%arg0: i32) -> (i32, i32) {
    %c0_i32 = arith.constant 0 : i32
    %c0_i32_0 = arith.constant 0 : i32
    %c0_i32_1 = arith.constant 0 : i32
    return %c0_i32, %c0_i32_0 : i32, i32
  }
  func.func @transform_3(%arg0: i32) -> (i32, i32) {
    %c0_i32 = arith.constant 0 : i32
    %c0_i32_0 = arith.constant 0 : i32
    %c0_i32_1 = arith.constant 0 : i32
    return %c0_i32, %c0_i32_0 : i32, i32
  }
  func.func @transform_4(%arg0: i32) -> (i32, i32) {
    %c0_i32 = arith.constant 0 : i32
    %c0_i32_0 = arith.constant 0 : i32
    %c0_i32_1 = arith.constant 0 : i32
    return %c0_i32, %c0_i32_0 : i32, i32
  }
  func.func @transform_5(%arg0: i32) -> (i32, i32) {
    %c0_i32 = arith.constant 0 : i32
    %c0_i32_0 = arith.constant 0 : i32
    return %arg0, %c0_i32 : i32, i32
  }
}

</mosaic_0001>

<bundles_post_ra>
// kernel: tpu_custom_call.1
= control target key start
LH: loop header
LB: loop body
LE: loop exit
PB: predicated region body
PF: predicated region fallthrough
CT: control target
= control target key end

     0   :  { %10 = vsyncpa [#allocation3], 0  ;;  %s516_s0 = inlined_call_operand.hbm [shape: f32[16,128], index: 0, kind: input, shape index: {}]   ;;  %s517_s1 = inlined_call_operand.vmem [shape: f32[1,128], index: 1, kind: input, shape index: {}]   ;;  %s518_s2 = inlined_call_operand.vmem [shape: f32[1,128], index: 2, kind: input, shape index: {}]   ;;  %s519_s3 = inlined_call_operand.hbm [shape: f32[128,128], index: 3, kind: input, shape index: {}]   ;;  %s520_s4 = inlined_call_operand.vmem [shape: f32[1,128], index: 4, kind: input, shape index: {}]   ;;  %s521_s5 = inlined_call_operand.hbm [shape: f32[16,128], index: 5, kind: output, shape index: {}]  }
   0x1   :  { %11 = vsyncpa [#allocation6], 0 }
   0x2   :  { %12 = vsyncpa [#allocation4], 0  ;;  %s407_s18 = smov [#allocation2]   ;;  %s335_s22 = scalar_lea.hbm %s516_s0, 256 }
   0x3   :  { %s18_s19 = sshll.u32 %s407_s18, 4  ;;  %p336_p0 = scmp.ne.s32.totalorder %s516_s0, %s335_s22  ;;  %s19_s19 = int_to_ptr.vmem [resolvable:$true] %s18_s19 }
   0x4   :  { %p339_p1 = scmp.lt.u32.totalorder %s335_s22, %s516_s0 }
   0x6   :  { %p341_p2 = pnand %p339_p1, %p336_p0 }
   0x8   :  { %344 = shalt.err (!%p341_p2)
}
   0x9   :  { %s345_s27 = scalar_lea.vmem %s19_s19, 256  ;;  %p350_p4 = scmp.lt.s32.totalorder %s19_s19, %s19_s19 }
   0xa   :  { %p346_p3 = scmp.ne.s32.totalorder %s19_s19, %s345_s27  ;;  %p351_p5 = scmp.lt.s32.totalorder %s345_s27, %s345_s27 }
   0xc   :  { %p352_p6 = por %p351_p5, %p350_p4 }
   0xe   :  { %p353_p7 = pnand %p352_p6, %p346_p3 }
  0x10   :  { %356 = shalt.err (!%p353_p7)
}
  0x11   :  { %s408_s28 = smov 128   ;;  %s409_s29 = smov 8  }
  0x12   :  { %24 = dma.hbm_to_vmem [thread:$0]  %s516_s0, 256, %s19_s19, [#allocation3], %s408_s28, %s408_s28, %s409_s29  }
  0x13   :  { %s410_s7 = smov [#allocation5]   ;;  %s357_s11 = scalar_lea.hbm %s519_s3, 2048 }
  0x14   :  { %s34_s8 = sshll.u32 %s410_s7, 4  ;;  %p358_p8 = scmp.ne.s32.totalorder %s519_s3, %s357_s11  ;;  %s35_s8 = int_to_ptr.vmem [resolvable:$true] %s34_s8 }
  0x15   :  { %p361_p9 = scmp.lt.u32.totalorder %s357_s11, %s519_s3 }
  0x17   :  { %p363_p10 = pnand %p361_p9, %p358_p8 }
  0x19   :  { %366 = shalt.err (!%p363_p10)
}
  0x1a   :  { %s367_s16 = scalar_lea.vmem %s35_s8, 2048  ;;  %p372_p12 = scmp.lt.s32.totalorder %s35_s8, %s35_s8 }
  0x1b   :  { %p368_p11 = scmp.ne.s32.totalorder %s35_s8, %s367_s16  ;;  %p373_p13 = scmp.lt.s32.totalorder %s367_s16, %s367_s16 }
  0x1d   :  { %p374_p0 = por %p373_p13, %p372_p12 }
  0x1f   :  { %p375_p1 = pnand %p374_p0, %p368_p11 }
  0x21   :  { %378 = shalt.err (!%p375_p1)
}
  0x22   :  { %40 = dma.hbm_to_vmem [thread:$0]  %s519_s3, 2048, %s35_s8, [#allocation6], %s408_s28, %s408_s28, %s409_s29  }
  0x23   :  { %401 = dma.done.wait [#allocation3], 256  }
  0x24   :  { %402 = vsyncadd [#allocation3], 4294967040 }
  0x25   :  { %403 = dma.done.wait [#allocation6], 2048  }
  0x26   :  { %404 = vsyncadd [#allocation6], 4294965248  ;;  %v472_v0 = vld [vmem:[#allocation2] sm:$0xff]  ;;  %v475_v1 = vld [vmem:[#allocation2 + $0x8] sm:$0xff] }
  0x27   :  { %51 = vadd.xlane.f32.xlu0 %v472_v0  ;;  %v112_v10 = vld [vmem:[#allocation5] sm:$0xff]  ;;  %v113_v11 = vld [vmem:[#allocation5 + $0x8] sm:$0xff]  ;;  %v114_v13 = vld [vmem:[#allocation5 + $0x10] sm:$0xff] }
  0x28   :  { %v290_v12 = vpack.c.bf16 %v113_v11, %v112_v10  ;;  %v115_v14 = vld [vmem:[#allocation5 + $0x18] sm:$0xff]  ;;  %v116_v16 = vld [vmem:[#allocation5 + $0x20] sm:$0xff]  ;;  %v117_v17 = vld [vmem:[#allocation5 + $0x28] sm:$0xff] }
  0x29   :  { %v294_v15 = vpack.c.bf16 %v115_v14, %v114_v13  ;;  %v118_v18 = vld [vmem:[#allocation5 + $0x30] sm:$0xff]  ;;  %v298_v19 = vpack.c.bf16 %v117_v17, %v116_v16  ;;  %v119_v20 = vld [vmem:[#allocation5 + $0x38] sm:$0xff]  ;;  %v120_v22 = vld [vmem:[#allocation5 + $0x40] sm:$0xff] }
  0x2a   :  { %291 = vmatprep.subr.bf16.mxu0 %v290_v12  ;;  %v302_v21 = vpack.c.bf16 %v119_v20, %v118_v18  ;;  %v121_v23 = vld [vmem:[#allocation5 + $0x48] sm:$0xff]  ;;  %v122_v25 = vld [vmem:[#allocation5 + $0x50] sm:$0xff]  ;;  %v123_v26 = vld [vmem:[#allocation5 + $0x58] sm:$0xff] }
  0x2b   :  { %53 = vadd.xlane.f32.xlu0 %v475_v1  ;;  %293 = vmatpush3.bf16.msra.mxu0 %v290_v12  ;;  %v306_v24 = vpack.c.bf16 %v121_v23, %v120_v22  ;;  %v310_v27 = vpack.c.bf16 %v123_v26, %v122_v25  ;;  %v124_v28 = vld [vmem:[#allocation5 + $0x60] sm:$0xff]  ;;  %v125_v29 = vld [vmem:[#allocation5 + $0x68] sm:$0xff]  ;;  %v126_v31 = vld [vmem:[#allocation5 + $0x70] sm:$0xff] }
  0x2c   :  { %295 = vmatprep.subr.bf16.mxu0 %v294_v15  ;;  %v314_v30 = vpack.c.bf16 %v125_v29, %v124_v28  ;;  %v127_v32 = vld [vmem:[#allocation5 + $0x78] sm:$0xff]  ;;  %v234_v56 = vld [vmem:[%s517_s1] ss:$0 sm:$0xff]  ;;  %s411_s1 = smov [#allocation7]  }
  0x2d   :  { %v318_v33 = vpack.c.bf16 %v127_v32, %v126_v31  ;;  %v235_v59 = vld [vmem:[%s518_s2] ss:$0 sm:$0xff]  ;;  %s221_s23 = sshll.u32 %s411_s1, 4  ;;  %s222_s23 = int_to_ptr.vmem [resolvable:$true] %s221_s23 }
  0x2e   :  { %s379_s2 = scalar_lea.vmem %s222_s23, 256  ;;  %p384_p3 = scmp.lt.s32.totalorder %s222_s23, %s222_s23 }
  0x2f   :  { %297 = vmatpush3.bf16.msra.mxu0 %v294_v15  ;;  %p380_p2 = scmp.ne.s32.totalorder %s222_s23, %s379_s2  ;;  %p385_p4 = scmp.lt.s32.totalorder %s379_s2, %s379_s2 }
  0x30   :  { %299 = vmatprep.subr.bf16.mxu0 %v298_v19 }
  0x31   :  { %p386_p5 = por %p385_p4, %p384_p3 }
  0x33   :  { %301 = vmatpush3.bf16.msra.mxu0 %v298_v19  ;;  %p387_p6 = pnand %p386_p5, %p380_p2 }
  0x34   :  { %303 = vmatprep.subr.bf16.mxu0 %v302_v21 }
  0x37   :  { %305 = vmatpush3.bf16.msra.mxu0 %v302_v21 }
  0x38   :  { %307 = vmatprep.subr.bf16.mxu0 %v306_v24 }
  0x3b   :  { %309 = vmatpush3.bf16.msra.mxu0 %v306_v24 }
  0x3c   :  { %311 = vmatprep.subr.bf16.mxu0 %v310_v27 }
  0x3f   :  { %313 = vmatpush3.bf16.msra.mxu0 %v310_v27 }
  0x40   :  { %315 = vmatprep.subr.bf16.mxu0 %v314_v30 }
  0x43   :  { %317 = vmatpush3.bf16.msra.mxu0 %v314_v30 }
  0x44   :  { %319 = vmatprep.subr.bf16.mxu0 %v318_v33 }
  0x47   :  { %321 = vmatpush3.bf16.msra.mxu0 %v318_v33 }
  0xb4   :  { %v52_v2 = vpop.xlane.xlu0 %51 }
  0xb5   :  { %v56_v3 = vmul.f32 0.0078125, %v52_v2 }
  0xb7   :  { %v479_v4 = vsub.f32 %v472_v0, %v56_v3 }
  0xb8   :  { %v54_v5 = vpop.xlane.xlu0 %53 }
  0xb9   :  { %v57_v6 = vmul.f32 0.0078125, %v54_v5  ;;  %v60_v7 = vmul.f32 %v479_v4, %v479_v4 }
  0xbb   :  { %v484_v8 = vsub.f32 %v475_v1, %v57_v6  ;;  %62 = vadd.xlane.f32.xlu1 %v60_v7  ;;  %v236_v6 = vld [vmem:[%s520_s4] ss:$0 sm:$0xff] }
  0xbd   :  { %v61_v9 = vmul.f32 %v484_v8, %v484_v8 }
  0xbf   :  { %64 = vadd.xlane.f32.xlu1 %v61_v9 }
 0x148   :  { %v63_v34 = vpop.xlane.xlu1 %62 }
 0x149   :  { %v66_v35 = vmul.f32 0.007874016, %v63_v34 }
 0x14b   :  { %327 = vrsqrt.f32 %v66_v35  ;;  %vm70_vm0 = vcmp.eq.f32.partialorder %v66_v35, inf  ;;  %v73_v40 = vand.u32 2147483648, %v66_v35  ;;  %vm72_vm1 = vcmp.eq.f32.partialorder %v66_v35, 0.0 }
 0x14c   :  { %v65_v36 = vpop.xlane.xlu1 %64 }
 0x14d   :  { %v67_v37 = vmul.f32 0.007874016, %v65_v36 }
 0x14f   :  { %329 = vrsqrt.f32 %v67_v37  ;;  %vm77_vm2 = vcmp.eq.f32.partialorder %v67_v37, inf  ;;  %v80_v46 = vand.u32 2147483648, %v67_v37  ;;  %vm79_vm3 = vcmp.eq.f32.partialorder %v67_v37, 0.0 }
 0x155   :  { %v328_v38 = vpop.eup %327 }
 0x156   :  { %v69_v39 = vmul.f32 %v328_v38, %v66_v35 }
 0x158   :  { %v71_v41 = vsel %vm70_vm0, %v66_v35, %v69_v39 }
 0x159   :  { %v330_v42 = vpop.eup %329  ;;  %v74_v43 = vsel %vm72_vm1, %v73_v40, %v71_v41 }
 0x15a   :  { %v76_v44 = vmul.f32 %v330_v42, %v67_v37  ;;  %v82_v45 = vadd.f32 1e-06, %v74_v43 }
 0x15c   :  { %v78_v47 = vsel %vm77_vm2, %v67_v37, %v76_v44  ;;  %331 = vrcp.f32 %v82_v45 }
 0x15d   :  { %v81_v48 = vsel %vm79_vm3, %v80_v46, %v78_v47 }
 0x15e   :  { %v83_v49 = vadd.f32 1e-06, %v81_v48 }
 0x160   :  { %333 = vrcp.f32 %v83_v49 }
 0x166   :  { %v332_v50 = vpop.eup %331 }
 0x167   :  { %v86_v51 = vmul.f32 %v332_v50, %v82_v45 }
 0x169   :  { %v88_v52 = vsub.f32 2.0, %v86_v51 }
 0x16a   :  { %v334_v53 = vpop.eup %333 }
 0x16b   :  { %v87_v54 = vmul.f32 %v334_v53, %v83_v49  ;;  %v90_v55 = vmul.f32 %v332_v50, %v88_v52 }
 0x16d   :  { %v89_v57 = vsub.f32 2.0, %v87_v54  ;;  %v93_v58 = vmul.f32 %v90_v55, %v479_v4 }
 0x16f   :  { %v91_v60 = vmul.f32 %v334_v53, %v89_v57  ;;  %v101_v61 = vmul.f32 %v234_v56, %v93_v58 }
 0x171   :  { %v94_v62 = vmul.f32 %v91_v60, %v484_v8  ;;  %v110_v63 = vadd.f32 %v235_v59, %v101_v61 }
 0x173   :  { %v102_v2 = vmul.f32 %v234_v56, %v94_v62  ;;  %287 = vmatprep.mubr.f32.mxu0 %v110_v63 }
 0x175   :  { %v111_v3 = vadd.f32 %v235_v59, %v102_v2 }
 0x177   :  { %288 = vmatmul.mubr.f32.vlgmr.msra.gmra.mrb[0].mxu0 %v111_v3 }
 0x24a   :  { %v289_v5 = vpop.f32.mrb[0].mxu0 }
 0x24b   :  { %v204_v4 = vadd.f32 %v289_v5, %v475_v1  ;;  %v194_v7 = vpop.f32.mrb[1].mxu0 }
 0x24c   :  { %v203_v9 = vadd.f32 %v194_v7, %v472_v0 }
 0x24d   :  { %v213_v10 = vadd.f32 %v236_v6, %v204_v4 }
 0x24e   :  { %v212_v11 = vadd.f32 %v236_v6, %v203_v9 }
 0x24f   :  { %215 = vst [vmem:[#allocation7 + $0x8] sm:$0xff] %v213_v10 }
 0x250   :  { %214 = vst [vmem:[#allocation7] sm:$0xff] %v212_v11 }
 0x251   :  { %390 = shalt.err (!%p387_p6)
}
 0x252   :  { %s391_s25 = scalar_lea.hbm %s521_s5, 256 }
 0x253   :  { %p392_p7 = scmp.ne.s32.totalorder %s521_s5, %s391_s25  ;;  %p395_p8 = scmp.lt.u32.totalorder %s391_s25, %s521_s5 }
 0x255   :  { %p397_p9 = pnand %p395_p8, %p392_p7 }
 0x257   :  { %400 = shalt.err (!%p397_p9)
}
 0x258   :  { %227 = dma.vmem_to_hbm [thread:$0]  %s222_s23, 256, %s521_s5, [#allocation4], %s408_s28, %s408_s28, %s409_s29  }
 0x259   :  { %405 = dma.done.wait [#allocation4], 256  }
 0x25a   :  { %406 = vsyncadd [#allocation4], 4294967040 }
 0x25b   :  { %231 = vsyncpa [#allocation3], 1 }
 0x25c   :  { %232 = vsyncpa [#allocation6], 1 }
 0x25d   :  { %233 = vsyncpa [#allocation4], 1 }

</bundles_post_ra>
